<compile_context>
chip_gen: v7x
topology: tpu7x:2x2x1
jax: 0.10.0
libtpu: 0.0.40
codegen_flags: <defaults>
</compile_context>

<pallas_src>
import math

import jax
import jax.numpy as jnp
from jax.experimental import pallas as pl
from jax.experimental.pallas import tpu as pltpu

# ---- cell constants (from AbstractConvexCell.__init__) ----------------------
EE = 0.0
EI = -85.0
GL0 = 0.166667
EL = -70.0
ALPHA = 1.0
THETA = EL - 0.0  # theta used in the rate nonlinearity f

_LANE = 128
_SUBLANE = 8


def _round_up(x, m):
    return (x + m - 1) // m * m


def _softplus(x):
    # matches torch.nn.functional.softplus(beta=1, threshold=20)
    return jnp.where(x > 20.0, x, jnp.log1p(jnp.exp(jnp.minimum(x, 20.0))))


# ---- Pallas kernel -----------------------------------------------------------
def _cell_kernel(gLd_ref, u_ref, w_ref, gff_ref, uff_ref):
    d = pl.program_id(0)            # dendrite index
    gL = gLd_ref[d]                 # scalar leak conductance (SMEM)

    # dendritic rate: r = f(u_in); input_scale is already folded into w.
    u = u_ref[...]                                            # (Bt, Fp) f32
    r = _softplus(ALPHA * (u - THETA)) * (1.0 / ALPHA)

    # one fused MXU matmul against [scale*softplus(omegaE) | scale*softplus(omegaI)]
    g = jnp.dot(r.astype(w_ref.dtype), w_ref[...],
                preferred_element_type=jnp.float32)           # (Bt, 2*Ot)
    half = g.shape[-1] // 2
    gE = g[:, :half]
    gI = g[:, half:]

    gff = gL + gE + gI
    # EE == 0 -> gE*EE term vanishes.  EUP approx reciprocal + one Newton step
    # (~f32-exact) keeps uffd inside [EI, EE] while staying off the VPU divide.
    inv = pl.reciprocal(gff, approx=True)
    inv = inv * (2.0 - gff * inv)
    uff = (gL * EL + gI * EI) * inv

    gff_ref[...] = gff.astype(gff_ref.dtype)
    uff_ref[...] = uff.astype(uff_ref.dtype)


# ---- weight pre-pass (hoist / cache this per weight version) -----------------
def _choose_out_tile(Fp, O, wbytes, budget_bytes=6 * 2 ** 20, max_tile=1024):
    # largest multiple of 128 (<= max_tile) such that the fused [E|I] weight
    # block Fp x (2*Ot) fits the per-buffer VMEM budget; clamp to padded O.
    cand = budget_bytes // (2 * wbytes * Fp)
    cand = max(_LANE, (cand // _LANE) * _LANE)
    cand = min(cand, max_tile)
    return min(cand, _round_up(O, _LANE))


def prepare_cell_weights(omegaE, omegaI, input_scale, *, use_bf16=True,
                         out_tile=None):
    """Precompute scale*softplus(omega), fuse E|I, pad, tile and (optionally)
    cast to bf16.  Do this once per weight version and reuse across calls."""
    D, F, O = omegaE.shape
    f32 = jnp.float32
    wdt = jnp.bfloat16 if use_bf16 else f32
    wbytes = 2 if use_bf16 else 4

    Fp = _round_up(F, _LANE)
    if out_tile is None:
        out_tile = _choose_out_tile(Fp, O, wbytes)
    Ot = min(max(_LANE, _round_up(out_tile, _LANE)), _round_up(O, _LANE))
    Op2 = _round_up(O, Ot)
    n_ot = Op2 // Ot

    scale = input_scale.reshape(D, F).astype(f32)
    wE = _softplus(omegaE.astype(f32)) * scale[:, :, None]
    wI = _softplus(omegaI.astype(f32)) * scale[:, :, None]
    # zero padding after softplus -> padded rows/cols contribute exactly 0.
    wE = jnp.pad(wE, ((0, 0), (0, Fp - F), (0, Op2 - O)))
    wI = jnp.pad(wI, ((0, 0), (0, Fp - F), (0, Op2 - O)))

    # per output-tile j: columns [j*Ot:(j+1)*Ot] of E and of I, concatenated.
    wE_t = wE.reshape(D, Fp, n_ot, Ot)
    wI_t = wI.reshape(D, Fp, n_ot, Ot)
    w = jnp.concatenate([wE_t, wI_t], axis=-1)       # (D, Fp, n_ot, 2*Ot)
    w = jnp.transpose(w, (0, 2, 1, 3)).astype(wdt)   # (D, n_ot, Fp, 2*Ot)

    return dict(w=w, D=D, F=F, O=O, Fp=Fp, Ot=Ot, Op2=Op2, n_ot=n_ot)


def _vmem_limit_bytes(need_bytes):
    try:
        cap = getattr(pltpu.get_tpu_info(), "vmem_capacity_bytes", 64 * 2 ** 20)
    except Exception:
        cap = 64 * 2 ** 20            # conservative fallback (valid on v7x too)
    # ~80% of physical VMEM leaves compiler-internal headroom:
    #   v5e/v6e -> ~102 MiB, v7x -> ~51 MiB.
    return int(min(int(0.8 * cap), max(2 * need_bytes, 32 * 2 ** 20)))


# ---- kernel wrapper ----------------------------------------------------------
def compute_gffd_and_uffd_prepared(u_in, prepared, gLd, *, batch_tile=None,
                                   out_dtype=jnp.float32, torch_layout=False):
    """Fused `AbstractConvexCell.compute_gffd_and_uffd` from pre-prepared weights.

    u_in:     (B, D*F)  membrane potentials, EI <= u <= EE
    prepared: output of `prepare_cell_weights`
    gLd:      (D,)
    Returns (gffd, uffd), each (D, B, O) (lane-dense kernel layout).  Pass
    torch_layout=True for the PyTorch (B, O, D) layout (extra HBM relayout).
    """
    w = prepared["w"]
    D, F, O = prepared["D"], prepared["F"], prepared["O"]
    Fp, Ot, Op2, n_ot = prepared["Fp"], prepared["Ot"], prepared["Op2"], prepared["n_ot"]
    B = u_in.shape[0]
    assert u_in.shape[1] == D * F
    f32 = jnp.float32

    # --- batch tiling: enforce an MXU-friendly floor (>=256) when B allows ---
    Bfull = _round_up(B, _SUBLANE)
    if batch_tile is None:
        batch_tile = 512
    batch_tile = max(batch_tile, 256)
    Bt = min(_round_up(batch_tile, _SUBLANE), Bfull)
    Bp = _round_up(Bfull, Bt)
    nb = Bp // Bt

    # u keeps (batch, features) layout -> no HBM transpose; dendrite d's padded
    # feature block is a 128-aligned column block picked by the index_map.
    # (padded feature lanes hit zero weight rows, so the pad value is moot)
    u3 = u_in.reshape(B, D, F).astype(f32)
    u3 = jnp.pad(u3, ((0, Bp - B), (0, 0), (0, Fp - F)), constant_values=EL)
    u_p = u3.reshape(Bp, D * Fp)

    gL = gLd.astype(f32)

    obytes = jnp.dtype(out_dtype).itemsize
    need = (2 * Fp * 2 * Ot * w.dtype.itemsize   # fused weight block (double-buffered)
            + 2 * Bt * Fp * 4                    # u block
            + 2 * 2 * Bt * Ot * obytes)          # two output blocks
    vmem_limit = _vmem_limit_bytes(need)
    # TODO(synk): for extremely large F (u block + weight block > VMEM even at
    # Ot=128) add a K (Fp) reduction grid axis with an accumulator scratch.

    grid_spec = pltpu.PrefetchScalarGridSpec(
        num_scalar_prefetch=0,
        grid=(D, n_ot, nb),   # batch innermost -> weight block stays resident
        in_specs=[
            pl.BlockSpec(memory_space=pltpu.MemorySpace.SMEM),            # gLd (D,)
            pl.BlockSpec((Bt, Fp), lambda d, j, b: (b, d)),               # u (Bp, D*Fp)
            pl.BlockSpec((pl.Squeezed(), pl.Squeezed(), Fp, 2 * Ot),
                         lambda d, j, b: (d, j, 0, 0)),                   # fused weights
        ],
        out_specs=[
            pl.BlockSpec((pl.Squeezed(), Bt, Ot), lambda d, j, b: (d, b, j)),  # gffd
            pl.BlockSpec((pl.Squeezed(), Bt, Ot), lambda d, j, b: (d, b, j)),  # uffd
        ],
    )

    gff_p, uff_p = pl.pallas_call(
        _cell_kernel,
        out_shape=(
            jax.ShapeDtypeStruct((D, Bp, Op2), out_dtype),
            jax.ShapeDtypeStruct((D, Bp, Op2), out_dtype),
        ),
        grid_spec=grid_spec,
        compiler_params=pltpu.CompilerParams(
            # every grid point writes a unique output block and there is no
            # scratch carry -> all axes can be megacore-sharded (v7x).
            dimension_semantics=("parallel", "parallel", "parallel"),
            vmem_limit_bytes=vmem_limit),
    )(gL, u_p, w)

    gffd = gff_p[:, :B, :O]
    uffd = uff_p[:, :B, :O]
    if torch_layout:
        # PyTorch layout (batch, out_features, n_dendrites) — costs a full HBM
        # relayout because D lands on the minor axis; avoid unless required.
        gffd = gffd.transpose(1, 2, 0)
        uffd = uffd.transpose(1, 2, 0)
    return gffd, uffd


def compute_gffd_and_uffd(u_in, omegaE, omegaI, input_scale, gLd, *,
                          batch_tile=None, use_bf16=True,
                          out_dtype=jnp.float32, torch_layout=False):
    """Convenience wrapper: prepares weights and runs the kernel.  If weights
    are static across calls, call `prepare_cell_weights` once and use
    `compute_gffd_and_uffd_prepared` to avoid re-doing the weight pre-pass.

    omegaE/I: (D, F, O) — equal in_features per dendrite (the torch module's
    ragged per-dendrite case is not supported by this fused kernel).
    """
    prepared = prepare_cell_weights(omegaE, omegaI, input_scale, use_bf16=use_bf16)
    return compute_gffd_and_uffd_prepared(u_in, prepared, gLd,
                                          batch_tile=batch_tile,
                                          out_dtype=out_dtype,
                                          torch_layout=torch_layout)


def compute_gff0_and_uff0(out_features):
    # trivial constants — no kernel needed
    gff0 = jnp.ones((1, out_features), jnp.float32) * GL0
    uff0 = jnp.ones((1, out_features), jnp.float32) * EL
    return gff0, uff0


# TODO(synk): `_forward`, `sample`, `energy_target`, `loss_target`,
# `compute_grad_manual_target` raise NotImplementedError in the abstract base
# class; only the concrete compute path (gffd/uffd, gff0/uff0) is implemented.


# ---- pure-JAX reference for validation ---------------------------------------
def _reference(u_in, omegaE, omegaI, input_scale, gLd):
    D, F, O = omegaE.shape
    r_full = input_scale * (_softplus(ALPHA * (u_in - THETA)) / ALPHA)
    g_list, u_list = [], []
    for d in range(D):
        rd = r_full[:, d * F:(d + 1) * F]
        gE = rd @ _softplus(omegaE[d])
        gI = rd @ _softplus(omegaI[d])
        g = gLd[d] + gE + gI
        u = (gLd[d] * EL + gE * EE + gI * EI) / g
        g_list.append(g)
        u_list.append(u)
    # (D, B, O) — same layout the kernel emits
    return jnp.stack(g_list, axis=0), jnp.stack(u_list, axis=0)


if __name__ == "__main__":
    # small, deliberately unaligned shapes to exercise the padding + tiling paths
    n_dendrites = 2
    in_features_per_dendrite = 96   # equal per dendrite; pads to 128
    out_features = 80               # pads to 128
    batch = 20                      # pads to 24 (single batch tile)
    D, F, O, B = n_dendrites, in_features_per_dendrite, out_features, batch

    key = jax.random.PRNGKey(0)
    k_u, k_e, k_i = jax.random.split(key, 3)

    # deterministic init following init_weights():
    #   weightE ~ U(0, stdv) * (EL - EI) / (EE - EL),  weightI ~ U(0, stdv)
    #   omega = log(exp(w) - 1)
    stdv = 0.2 / math.sqrt(F)
    wE0 = jax.random.uniform(k_e, (D, F, O), jnp.float32,
                             minval=1e-6, maxval=stdv) * (EL - EI) / (EE - EL)
    wI0 = jax.random.uniform(k_i, (D, F, O), jnp.float32, minval=1e-6, maxval=stdv)
    omegaE = jnp.log(jnp.expm1(wE0))
    omegaI = jnp.log(jnp.expm1(wI0))

    input_scale = jnp.ones((D * F,), jnp.float32)
    gLd = jnp.ones((D,), jnp.float32) * GL0

    # valid voltages: EI <= u_in <= EE
    u_in = jax.random.uniform(k_u, (B, D * F), jnp.float32, minval=EI, maxval=EE)

    gffd, uffd = compute_gffd_and_uffd(u_in, omegaE, omegaI, input_scale, gLd)
    jax.block_until_ready((gffd, uffd))

    gffd_ref, uffd_ref = _reference(u_in, omegaE, omegaI, input_scale, gLd)
    assert gffd.shape == (D, B, O) and uffd.shape == (D, B, O)
    # bf16 matmul inputs (f32 accumulate) -> tolerances loosened accordingly
    assert jnp.allclose(gffd, gffd_ref, rtol=2e-2, atol=2e-2), \
        float(jnp.max(jnp.abs(gffd - gffd_ref)))
    assert jnp.allclose(uffd, uffd_ref, rtol=2e-2, atol=1.0), \
        float(jnp.max(jnp.abs(uffd - uffd_ref)))
    # sanity: valid conductance and voltage ranges (as the module asserts);
    # small slack on the voltage range for bf16 matmul rounding near EI.
    assert bool(jnp.all(gffd >= 0.0))
    assert bool(jnp.all((uffd >= EI - 0.25) & (uffd <= EE + 0.25)))

    gff0, uff0 = compute_gff0_and_uff0(O)
    jax.block_until_ready((gff0, uff0))

    print("KERNEL_OK")
</pallas_src>

<mosaic_0001>
module attributes {stable_mosaic.version = 11 : i64} {
  func.func @_cell_kernel(%arg0: i32, %arg1: i32, %arg2: i32, %arg3: memref<2xf32, #tpu.memory_space<smem>>, %arg4: memref<24x128xf32, #tpu.memory_space<vmem>>, %arg5: memref<1x1x128x256xbf16, #tpu.memory_space<vmem>>, %arg6: memref<1x24x128xf32, #tpu.memory_space<vmem>>, %arg7: memref<1x24x128xf32, #tpu.memory_space<vmem>>) attributes {dimension_semantics = [#tpu.dimension_semantics<parallel>, #tpu.dimension_semantics<parallel>, #tpu.dimension_semantics<parallel>], iteration_bounds = array<i64: 2, 1, 1>, scalar_prefetch = 0 : i64, scratch_operands = 0 : i64, tpu.core_type = #tpu.core_type<tc>, window_params = [{transform_indices = @transform_0, window_bounds = array<i64: 2>}, {transform_indices = @transform_1, window_bounds = array<i64: 24, 128>}, {transform_indices = @transform_2, window_bounds = array<i64: 1, 1, 128, 256>}, {transform_indices = @transform_3, window_bounds = array<i64: 1, 24, 128>}, {transform_indices = @transform_4, window_bounds = array<i64: 1, 24, 128>}]} {
    %0 = arith.index_cast %arg0 : i32 to index
    %1 = memref.load %arg3[%0] : memref<2xf32, #tpu.memory_space<smem>>
    %c0 = arith.constant 0 : index
    %c0_0 = arith.constant 0 : index
    %2 = vector.load %arg4[%c0, %c0_0] : memref<24x128xf32, #tpu.memory_space<vmem>>, vector<24x128xf32>
    %cst = arith.constant -7.000000e+01 : f32
    %3 = vector.broadcast %cst : f32 to vector<24x128xf32>
    %4 = arith.subf %2, %3 : vector<24x128xf32>
    %cst_1 = arith.constant 1.000000e+00 : f32
    %5 = vector.broadcast %cst_1 : f32 to vector<24x128xf32>
    %6 = arith.mulf %5, %4 : vector<24x128xf32>
    %cst_2 = arith.constant 2.000000e+01 : f32
    %7 = vector.broadcast %cst_2 : f32 to vector<24x128xf32>
    %8 = arith.cmpf ogt, %6, %7 : vector<24x128xf32>
    %cst_3 = arith.constant 2.000000e+01 : f32
    %9 = vector.broadcast %cst_3 : f32 to vector<24x128xf32>
    %10 = arith.minimumf %6, %9 : vector<24x128xf32>
    %11 = math.exp %10 : vector<24x128xf32>
    %12 = math.log1p %11 : vector<24x128xf32>
    %13 = arith.select %8, %6, %12 : vector<24x128xi1>, vector<24x128xf32>
    %cst_4 = arith.constant 1.000000e+00 : f32
    %14 = vector.broadcast %cst_4 : f32 to vector<24x128xf32>
    %15 = arith.mulf %13, %14 : vector<24x128xf32>
    %16 = arith.truncf %15 : vector<24x128xf32> to vector<24x128xbf16>
    %c0_5 = arith.constant 0 : index
    %c0_6 = arith.constant 0 : index
    %c0_7 = arith.constant 0 : index
    %c0_8 = arith.constant 0 : index
    %17 = vector.load %arg5[%c0_5, %c0_6, %c0_7, %c0_8] : memref<1x1x128x256xbf16, #tpu.memory_space<vmem>>, vector<1x1x128x256xbf16>
    %18 = vector.shape_cast %17 : vector<1x1x128x256xbf16> to vector<128x256xbf16>
    %cst_9 = arith.constant dense<0.000000e+00> : vector<24x256xf32>
    %19 = tpu.matmul %16, %18, %cst_9 {dimension_numbers = #tpu.dot_dimension_numbers<[1], [0], [0], [1], [0, 0, 1, 1], [], []>} : vector<24x128xbf16>, vector<128x256xbf16>, vector<24x256xf32> -> vector<24x256xf32>
    %20 = vector.extract_strided_slice %19 {offsets = [0, 0], sizes = [24, 128], strides = [1, 1]} : vector<24x256xf32> to vector<24x128xf32>
    %21 = vector.extract_strided_slice %19 {offsets = [0, 128], sizes = [24, 128], strides = [1, 1]} : vector<24x256xf32> to vector<24x128xf32>
    %22 = vector.broadcast %1 : f32 to vector<24x128xf32>
    %23 = arith.addf %22, %20 : vector<24x128xf32>
    %24 = arith.addf %23, %21 : vector<24x128xf32>
    %25 = tpu.reciprocal %24 {approx = true} : vector<24x128xf32> -> vector<24x128xf32>
    %26 = arith.mulf %24, %25 : vector<24x128xf32>
    %cst_10 = arith.constant 2.000000e+00 : f32
    %27 = vector.broadcast %cst_10 : f32 to vector<24x128xf32>
    %28 = arith.subf %27, %26 : vector<24x128xf32>
    %29 = arith.mulf %25, %28 : vector<24x128xf32>
    %cst_11 = arith.constant -7.000000e+01 : f32
    %30 = arith.mulf %1, %cst_11 : f32
    %cst_12 = arith.constant -8.500000e+01 : f32
    %31 = vector.broadcast %cst_12 : f32 to vector<24x128xf32>
    %32 = arith.mulf %21, %31 : vector<24x128xf32>
    %33 = vector.broadcast %30 : f32 to vector<24x128xf32>
    %34 = arith.addf %33, %32 : vector<24x128xf32>
    %35 = arith.mulf %34, %29 : vector<24x128xf32>
    %c0_13 = arith.constant 0 : index
    %c0_14 = arith.constant 0 : index
    %c0_15 = arith.constant 0 : index
    %36 = vector.load %arg6[%c0_13, %c0_14, %c0_15] : memref<1x24x128xf32, #tpu.memory_space<vmem>>, vector<1x24x128xf32>
    %37 = vector.shape_cast %36 : vector<1x24x128xf32> to vector<24x128xf32>
    %38 = vector.shape_cast %24 : vector<24x128xf32> to vector<1x24x128xf32>
    tpu.vector_store %arg6[%c0_13, %c0_14, %c0_15], %38 {strides = array<i32>} : memref<1x24x128xf32, #tpu.memory_space<vmem>>, vector<1x24x128xf32>,
    %c0_16 = arith.constant 0 : index
    %c0_17 = arith.constant 0 : index
    %c0_18 = arith.constant 0 : index
    %39 = vector.load %arg7[%c0_16, %c0_17, %c0_18] : memref<1x24x128xf32, #tpu.memory_space<vmem>>, vector<1x24x128xf32>
    %40 = vector.shape_cast %39 : vector<1x24x128xf32> to vector<24x128xf32>
    %41 = vector.shape_cast %35 : vector<24x128xf32> to vector<1x24x128xf32>
    tpu.vector_store %arg7[%c0_16, %c0_17, %c0_18], %41 {strides = array<i32>} : memref<1x24x128xf32, #tpu.memory_space<vmem>>, vector<1x24x128xf32>,
    return
  }
  func.func @transform_0(%arg0: i32, %arg1: i32, %arg2: i32) -> i32 {
    %c0_i32 = arith.constant 0 : i32
    %c0_i32_0 = arith.constant 0 : i32
    return %c0_i32 : i32
  }
  func.func @transform_1(%arg0: i32, %arg1: i32, %arg2: i32) -> (i32, i32) {
    %c0_i32 = arith.constant 0 : i32
    return %arg2, %arg0 : i32, i32
  }
  func.func @transform_2(%arg0: i32, %arg1: i32, %arg2: i32) -> (i32, i32, i32, i32) {
    %c0_i32 = arith.constant 0 : i32
    %c0_i32_0 = arith.constant 0 : i32
    %c0_i32_1 = arith.constant 0 : i32
    return %arg0, %arg1, %c0_i32, %c0_i32_0 : i32, i32, i32, i32
  }
  func.func @transform_3(%arg0: i32, %arg1: i32, %arg2: i32) -> (i32, i32, i32) {
    %c0_i32 = arith.constant 0 : i32
    return %arg0, %arg2, %arg1 : i32, i32, i32
  }
  func.func @transform_4(%arg0: i32, %arg1: i32, %arg2: i32) -> (i32, i32, i32) {
    %c0_i32 = arith.constant 0 : i32
    return %arg0, %arg2, %arg1 : i32, i32, i32
  }
}

</mosaic_0001>

<bundles_post_ra>
// kernel: tpu_custom_call.1
= control target key start
LH: loop header
LB: loop body
LE: loop exit
PB: predicated region body
PF: predicated region fallthrough
CT: control target
= control target key end

     0   :  { %s1522_s0 = inlined_call_operand.hbm [shape: f32[2], index: 0, kind: input, shape index: {}]   ;;  %s1523_s1 = inlined_call_operand.hbm [shape: f32[24,256], index: 1, kind: input, shape index: {}]   ;;  %s1524_s2 = inlined_call_operand.hbm [shape: bf16[2,1,128,256], index: 2, kind: input, shape index: {}]   ;;  %s1525_s3 = inlined_call_operand.hbm [shape: f32[2,24,128], index: 3, kind: output, shape index: {0}]   ;;  %s1526_s4 = inlined_call_operand.hbm [shape: f32[2,24,128], index: 4, kind: output, shape index: {1}]  }
   0x1   :  { %1532 = sst [smem:[#allocation19_spill]] %s1522_s0 }
   0x2   :  { %1533 = sst [smem:[#allocation20_spill]] %s1523_s1 }
   0x3   :  { %10 = vsyncpa [#allocation5], 0 }
   0x4   :  { %11 = vsyncpa [#allocation3], 0 }
   0x5   :  { %13 = vsyncpa [#allocation3 + $0x1], 0 }
   0x6   :  { %14 = vsyncpa [#allocation8], 0 }
   0x7   :  { %16 = vsyncpa [#allocation8 + $0x1], 0 }
   0x8   :  { %17 = vsyncpa [#allocation4], 0 }
   0x9   :  { %19 = vsyncpa [#allocation4 + $0x1], 0 }
   0xa   :  { %20 = vsyncpa [#allocation11], 0 }
   0xb   :  { %22 = vsyncpa [#allocation11 + $0x1], 0  ;;  %s1177_s15 = smov 0   ;;  %s1179_s16 = smov 0  }
   0xc   :  { %s1181_s17 = smov 0   ;;  %s1183_s18 = smov 0  }
   0xd   :  { %s1185_s19 = smov 0   ;;  %s1187_s20 = smov 0  }
   0xe LB: > { %s757_s21 = sadd.s32 4294967295, %s1139_s20   ;;  %s758_s22 = sadd.s32 4294967294, %s1139_s20   ;;  %s1139_s20 = sphi %s1187_s20, %s28_s20   ;;  %s1135_s19 = sphi %s1185_s19, %s1557_s19   ;;  %s1131_s18 = sphi %s1183_s18, %s1556_s18   ;;  %s1127_s17 = sphi %s1181_s17, %s1555_s17   ;;  %s1123_s16 = sphi %s1179_s16, %s1554_s16   ;;  %s1119_s15 = sphi %s1177_s15, %s1553_s15  }
   0xf   : > { %s77_s23 = sadd.s32 1, %s1127_s17  ;;  %p84_p0 = scmp.ne.s32.totalorder %s1127_s17, %s1123_s16 }
  0x10   : > { %p85_p1 = scmp.eq.s32.totalorder %s1139_s20, 0  ;;  %p90_p2 = scmp.ne.s32.totalorder %s1123_s16, %s1119_s15 }
  0x11   : > { %p1215_p3 = scmp.eq.s32.totalorder %s757_s21, 0  ;;  %p146_p4 = scmp.eq.s32.totalorder %s757_s21, 1 }
  0x12   : > { %p86_p5 = por %p85_p1, %p84_p0  ;;  %p152_p6 = scmp.eq.s32.totalorder %s758_s22, 1 }
  0x13   : > { %s1534_s24 = scalar_select %p1215_p3, 1, 0 }
  0x14   : > { %p1221_p7 = por %p1215_p3, %p90_p2  ;;  %p1225_p8 = por %p146_p4, %p84_p0 }
  0x15   : > { %p1229_p9 = por %p152_p6, %p90_p2  ;;  %p759_p10 = scmp.ge.s32.totalorder %s1139_s20, 1 }
  0x16   : > { %s1535_s25 = scalar_select %p1221_p7, 1, 0 }
  0x17   : > { %s1536_s26 = scalar_select %p1225_p8, 1, 0 }
  0x18   : > { %s1537_s27 = scalar_select %p1229_p9, 1, 0 }
  0x19   : > { %p189_p11 = scmp.lt.s32.totalorder %s1139_s20, 3  ;;  %p844_p1 = scmp.lt.s32.totalorder %s1139_s20, 2 }
  0x1a   : > { %s1242_s29 = sand.u32 1, %s1127_s17   ;;  %s47_s5 = sadd.s32 1, %s1135_s19 }
  0x1b   : > { %p1236_p13 = pnand %p759_p10, %p189_p11  ;;  %p1246_p4 = pnand %p844_p1, %p86_p5 }
  0x1c   : > { %s809_s6 = smul.u32 24, %s1242_s29  ;;  %p49_p6 = scmp.ge.s32.totalorder %s47_s5, 2 }
  0x1d   : > { %p825_p0 = pneg %p1236_p13  ;;  %s1540_s0 = sld [smem:[#allocation19_spill]] }
  0x1f   : > { %p826_p2 = pnand %p825_p0, %p1215_p3 }
  0x21   : > { %p946_p11 = pneg %p826_p2 }
  0x23   : > { %s944_s9 = scalar_lea.hbm %s1540_s0, 16 }
  0x24   : > { %p945_p10 = scmp.ne.s32.totalorder %s1540_s0, %s944_s9  ;;  %p951_p5 = scmp.lt.u32.totalorder %s944_s9, %s1540_s0 }
  0x26   : > { %p947_p12 = pnand %p946_p11, %p945_p10 }
  0x28   : > { %p948_p9 = pneg %p947_p12 }
  0x2a   : > { %p953_p1 = pnand %p951_p5, %p948_p9 }
  0x2c   : > { %956 = shalt.err (!%p953_p1)
}
  0x2d   : > { %s1141_s14 = smov [#allocation2]   ;;  %s1559_s5 = smov (%p49_p6, %s47_s5), 0 }
  0x2e   : > { %828 = dma.hbm_to_smem (!%p826_p2), %s1540_s0, 16, %s1141_s14, [#allocation5]  }
  0x2f   : > { %1541 = sst [smem:[#allocation17_spill]] %s1559_s5  ;;  %s762_s7 = sshll.u32 %s1135_s19, 7 }
  0x30   : > { %s73_s8 = ssub.s32 %s1135_s19, %s1559_s5  ;;  %s1542_s1 = sld [smem:[#allocation20_spill]] }
  0x31   : > { %p75_p9 = scmp.eq.s32.totalorder %s73_s8, 0  ;;  %s215_s12 = scalar_lea.vmem [#allocation6], %s809_s6 }
  0x32   : > { %s224_s13 = sshll.u32 %s215_s12, 4  ;;  %s212_s21 = scalar_lea.sflag [#allocation3], %s1242_s29  ;;  %s1276_s13 = int_to_ptr.vmem [resolvable:$true] %s224_s13 }
  0x33   : > { %s1281_s14 = scalar_select %p75_p9, %s1127_s17, %s77_s23  }
  0x34   : > { %p959_p0 = pneg %p1246_p4 }
  0x35   : > { %1543 = sst [smem:[#allocation18_spill]] %s1281_s14 }
  0x36   : > { %s1274_s11 = scalar_lea.hbm %s1542_s1, %s762_s7  ;;  %s962_s8 = scalar_lea.hbm %s1542_s1, 768 }
  0x37   : > { %s957_s22 = scalar_lea.hbm %s1274_s11, 384  ;;  %p963_p10 = scmp.lt.u32.totalorder %s1274_s11, %s1542_s1 }
  0x38   : > { %p958_p12 = scmp.ne.s32.totalorder %s1274_s11, %s957_s22  ;;  %p964_p11 = scmp.lt.u32.totalorder %s962_s8, %s957_s22 }
  0x39   : > { %p966_p1 = scmp.lt.u32.totalorder %s957_s22, %s1274_s11 }
  0x3a   : > { %p960_p2 = pnand %p959_p0, %p958_p12  ;;  %p965_p5 = por %p964_p11, %p963_p10 }
  0x3c   : > { %p961_p6 = pneg %p960_p2  ;;  %p967_p9 = por %p966_p1, %p965_p5 }
  0x3e   : > { %p968_p8 = pnand %p967_p9, %p961_p6 }
  0x40   : > { %971 = shalt.err (!%p968_p8)
}
  0x41   : > { %s972_s23 = scalar_lea.vmem %s1276_s13, 384  ;;  %s1142_s12 = smov [#allocation6]  }
  0x42   : > { %p973_p12 = scmp.ne.s32.totalorder %s1276_s13, %s972_s23  ;;  %s977_s7 = sshll.u32 %s1142_s12, 4  ;;  %s978_s7 = int_to_ptr.vmem [resolvable:$false] %s977_s7 }
  0x43   : > { %s979_s9 = scalar_lea.vmem %s978_s7, 768  ;;  %p980_p3 = scmp.lt.s32.totalorder %s1276_s13, %s978_s7 }
  0x44   : > { %p975_p2 = pnand %p973_p12, %p959_p0  ;;  %p981_p10 = scmp.lt.s32.totalorder %s979_s9, %s972_s23 }
  0x46   : > { %p976_p7 = pneg %p975_p2  ;;  %p982_p11 = por %p981_p10, %p980_p3 }
  0x48   : > { %p983_p5 = pnand %p982_p11, %p976_p7 }
  0x4a   : > { %986 = shalt.err (!%p983_p5)
}
  0x4b   : > { %s1143_s22 = smov 256   ;;  %s1144_s8 = smov 128  }
  0x4c   : > { %s1145_s6 = smov 8   ;;  %s763_s10 = sshll.u32 %s1242_s29, 7 }
  0x4d   : > { %832 = dma.hbm_to_vmem [thread:$0]  (!%p1246_p4), %s1274_s11, 384, %s1276_s13, %s212_s21, %s1143_s22, %s1144_s8, %s1145_s6  }
  0x4e   : > { %s792_s23 = sshll.u32 %s1135_s19, 11  ;;  %s238_s0 = scalar_lea.vmem [#allocation7], %s763_s10 }
  0x4f   : > { %s1318_s9 = scalar_lea.hbm %s1524_s2, %s792_s23  ;;  %s247_s1 = sshll.u32 %s238_s0, 4  ;;  %s1320_s1 = int_to_ptr.vmem [resolvable:$true] %s247_s1 }
  0x50   : > { %s235_s5 = scalar_lea.sflag [#allocation8], %s1242_s29  ;;  %s987_s14 = scalar_lea.hbm %s1318_s9, 2048 }
  0x51   : > { %p988_p3 = scmp.ne.s32.totalorder %s1318_s9, %s987_s14  ;;  %s992_s21 = scalar_lea.hbm %s1524_s2, 4096 }
  0x52   : > { %p993_p6 = scmp.lt.u32.totalorder %s1318_s9, %s1524_s2  ;;  %p994_p1 = scmp.lt.u32.totalorder %s992_s21, %s987_s14 }
  0x53   : > { %p990_p7 = pnand %p988_p3, %p959_p0  ;;  %p996_p12 = scmp.lt.u32.totalorder %s987_s14, %s1318_s9 }
  0x54   : > { %p995_p9 = por %p994_p1, %p993_p6 }
  0x55   : > { %p991_p8 = pneg %p990_p7 }
  0x56   : > { %p997_p2 = por %p996_p12, %p995_p9 }
  0x58   : > { %p998_p10 = pnand %p997_p2, %p991_p8 }
  0x5a   : > { %1001 = shalt.err (!%p998_p10)
}
  0x5b   : > { %s1002_s0 = scalar_lea.vmem %s1320_s1, 2048  ;;  %s1146_s10 = smov [#allocation7]  }
  0x5c   : > { %p1003_p11 = scmp.ne.s32.totalorder %s1320_s1, %s1002_s0  ;;  %s1007_s12 = sshll.u32 %s1146_s10, 4  ;;  %s1008_s12 = int_to_ptr.vmem [resolvable:$false] %s1007_s12 }
  0x5d   : > { %s1009_s7 = scalar_lea.vmem %s1008_s12, 4096  ;;  %p1010_p7 = scmp.lt.s32.totalorder %s1320_s1, %s1008_s12 }
  0x5e   : > { %p1005_p5 = pnand %p1003_p11, %p959_p0  ;;  %p1011_p6 = scmp.lt.s32.totalorder %s1009_s7, %s1002_s0 }
  0x60   : > { %p1006_p3 = pneg %p1005_p5  ;;  %p1012_p1 = por %p1011_p6, %p1010_p7 }
  0x62   : > { %p1013_p9 = pnand %p1012_p1, %p1006_p3 }
  0x64   : > { %1016 = shalt.err (!%p1013_p9)
}
  0x65   : > { %835 = dma.hbm_to_vmem [thread:$0]  (!%p1246_p4), %s1318_s9, 2048, %s1320_s1, %s235_s5, %s1144_s8, %s1144_s8, %s1145_s6  }
  0x66   : > { %259 = sbr.rel (%p1236_p13) target bundleno = 419 (0x1a3), region = 32  ;;  %p1544_p0 = scmp.ne.s32.totalorder (!%p1236_p13), %s1534_s24, 0 }
  0x6d   : > { %1098 = dma.done.wait (%p1544_p0), [#allocation5], 16  }
  0x6e   : > { %1100 = vsyncadd (%p1544_p0), [#allocation5], 4294967280  ;;  %s1358_s30 = sand.u32 1, %s1123_s16   ;;  %p1545_p4 = scmp.ne.s32.totalorder %s1535_s25, 0 }
  0x6f   : > { %s1361_s14 = smul.u32 24, %s1358_s30  ;;  %s266_s29 = scalar_lea.sflag [#allocation3], %s1358_s30 }
  0x71   : > { %s1365_s1 = scalar_lea.vmem [#allocation6], %s1361_s14 }
  0x72   : > { %1102 = dma.done.wait (%p1545_p4), %s266_s29, 384  }
  0x73   : > { %1104 = vsyncadd (%p1545_p4), %s266_s29, 4294966912  ;;  %s768_s24 = sshll.u32 %s1358_s30, 7  ;;  %s275_s28 = scalar_lea.sflag [#allocation8], %s1358_s30 }
  0x74   : > { %s1373_s5 = scalar_lea.vmem [#allocation7], %s768_s24 }
  0x75   : > { %1106 = dma.done.wait (%p1545_p4), %s275_s28, 2048  }
  0x76   : > { %1108 = vsyncadd (%p1545_p4), %s275_s28, 4294965248 }
  0x77   : > { %283 = sfence }
  0x78   : > { %v902_v0 = vld [vmem:[%s1373_s5 + $0x4] ss:$8 sps:$4 sm:$0xff]   ;;  %v904_v1 = vld [vmem:[%s1373_s5] ss:$8 sps:$4 sm:$0xff]   ;;  %v1147_v2 = vmov 0   ;;  %v320_v10 = vld [vmem:[%s1365_s1 + $0x8] sm:$0xff] }
  0x79   : > { %497 = vmatprep.mubr.bf16.mxu0 %v1147_v2  ;;  %507 = vmatprep.mubr.bf16.mxu1 %v1147_v2  ;;  %v905_v3 = vld [vmem:[%s1373_s5 + $0x14] ss:$8 sps:$4 sm:$0xff]   ;;  %v907_v4 = vld [vmem:[%s1373_s5 + $0x10] ss:$8 sps:$4 sm:$0xff]   ;;  %v908_v5 = vld [vmem:[%s1373_s5 + $0x24] ss:$8 sps:$4 sm:$0xff]  }
  0x7a   : > { %465 = vmatprep.subr.bf16.mxu0 %v902_v0  ;;  %793 = vmatprep.subr.bf16.mxu1 %v902_v0  ;;  %v910_v6 = vld [vmem:[%s1373_s5 + $0x20] ss:$8 sps:$4 sm:$0xff]   ;;  %v911_v7 = vld [vmem:[%s1373_s5 + $0x34] ss:$8 sps:$4 sm:$0xff]   ;;  %v913_v9 = vld [vmem:[%s1373_s5 + $0x30] ss:$8 sps:$4 sm:$0xff]  }
  0x7b   : > { %466 = vmatpush1.bf16.msra.mxu0 %v904_v1  ;;  %801 = vmatpush1.bf16.msra.mxu1 %v904_v1  ;;  %v319_v8 = vld [vmem:[%s1365_s1] sm:$0xff]  ;;  %v321_v12 = vld [vmem:[%s1365_s1 + $0x10] sm:$0xff]  ;;  %v1393_v14 = vadd.f32 70.0, %v320_v10  ;;  %s1420_s25 = sld [smem:[#allocation2 + %s1131_s18]]  ;;  %s306_s8 = scalar_lea.vmem [#allocation9], %s1361_s14 }
  0x7c   : > { %467 = vmatprep.subr.bf16.mxu0 %v905_v3  ;;  %794 = vmatprep.subr.bf16.mxu1 %v905_v3  ;;  %v1389_v11 = vadd.f32 70.0, %v319_v8  ;;  %v914_v13 = vld [vmem:[%s1373_s5 + $0x44] ss:$8 sps:$4 sm:$0xff]   ;;  %v1395_v15 = vadd.f32 70.0, %v321_v12  ;;  %v916_v19 = vld [vmem:[%s1373_s5 + $0x40] ss:$8 sps:$4 sm:$0xff]  }
  0x7d   : > { %v329_v17 = vmin.f32 %v1393_v14, 20.0  ;;  %v917_v21 = vld [vmem:[%s1373_s5 + $0x54] ss:$8 sps:$4 sm:$0xff]   ;;  %v919_v24 = vld [vmem:[%s1373_s5 + $0x50] ss:$8 sps:$4 sm:$0xff]   ;;  %vm326_vm3 = vcmp.gt.f32.partialorder %v1393_v14, 20.0 }
  0x7e   : > { %v328_v16 = vmin.f32 %v1389_v11, 20.0  ;;  %v330_v18 = vmin.f32 %v1395_v15, 20.0  ;;  %v920_v25 = vld [vmem:[%s1373_s5 + $0x64] ss:$8 sps:$4 sm:$0xff]   ;;  %v922_v26 = vld [vmem:[%s1373_s5 + $0x60] ss:$8 sps:$4 sm:$0xff]  }
  0x7f   : > { %468 = vmatpush1.bf16.msra.mxu0 %v907_v4  ;;  %802 = vmatpush1.bf16.msra.mxu1 %v907_v4  ;;  %v333_v22 = vmul.f32 1.442695, %v329_v17  ;;  %v923_v27 = vld [vmem:[%s1373_s5 + $0x74] ss:$8 sps:$4 sm:$0xff]   ;;  %v925_v29 = vld [vmem:[%s1373_s5 + $0x70] ss:$8 sps:$4 sm:$0xff]  }
  0x80   : > { %469 = vmatprep.subr.bf16.mxu0 %v908_v5  ;;  %795 = vmatprep.subr.bf16.mxu1 %v908_v5  ;;  %v331_v20 = vmul.f32 1.442695, %v328_v16  ;;  %v335_v23 = vmul.f32 1.442695, %v330_v18  ;;  %vm325_vm1 = vcmp.gt.f32.partialorder %v1389_v11, 20.0  ;;  %vm327_vm5 = vcmp.gt.f32.partialorder %v1395_v15, 20.0 }
  0x81   : > { %v516_v62 = vstv %s1420_s25  ;;  %s574_s6 = sshll.u32 %s306_s8, 4  ;;  %s811_s9 = smul.u32 384, %s1131_s18  ;;  %s1425_s6 = int_to_ptr.vmem [resolvable:$true] %s574_s6 }
  0x82   : > { %926 = vpow2.f32 %v331_v20  ;;  %s553_s22 = scalar_lea.sflag [#allocation4], %s1358_s30  ;;  %s1017_s23 = scalar_lea.vmem %s1425_s6, 384 }
  0x83   : > { %470 = vmatpush1.bf16.msra.mxu0 %v910_v6  ;;  %803 = vmatpush1.bf16.msra.mxu1 %v910_v6  ;;  %928 = vpow2.f32 %v333_v22  ;;  %s1432_s21 = scalar_lea.hbm %s1525_s3, %s811_s9  ;;  %p1018_p13 = scmp.ne.s32.totalorder %s1425_s6, %s1017_s23 }
  0x84   : > { %471 = vmatprep.subr.bf16.mxu0 %v911_v7  ;;  %796 = vmatprep.subr.bf16.mxu1 %v911_v7  ;;  %930 = vpow2.f32 %v335_v23  ;;  %p1548_p8 = scmp.ne.s32.totalorder %s1536_s26, 0  ;;  %s1148_s0 = smov [#allocation9]  }
  0x85   : > { %s1021_s10 = sshll.u32 %s1148_s0, 4  ;;  %s1022_s10 = int_to_ptr.vmem [resolvable:$false] %s1021_s10 }
  0x86   : > { %p1019_p12 = pnand %p1018_p13, %p1548_p8  ;;  %s1023_s12 = scalar_lea.vmem %s1022_s10, 768 }
  0x87   : > { %472 = vmatpush1.bf16.msra.mxu0 %v913_v9  ;;  %804 = vmatpush1.bf16.msra.mxu1 %v913_v9  ;;  %p1024_p10 = scmp.lt.s32.totalorder %s1425_s6, %s1022_s10  ;;  %p1025_p11 = scmp.lt.s32.totalorder %s1023_s12, %s1017_s23 }
  0x88   : > { %473 = vmatprep.subr.bf16.mxu0 %v914_v13  ;;  %797 = vmatprep.subr.bf16.mxu1 %v914_v13  ;;  %p1020_p2 = pneg %p1019_p12 }
  0x89   : > { %p1026_p5 = por %p1025_p11, %p1024_p10 }
  0x8b   : > { %474 = vmatpush1.bf16.msra.mxu0 %v916_v19  ;;  %805 = vmatpush1.bf16.msra.mxu1 %v916_v19  ;;  %p1027_p3 = pnand %p1026_p5, %p1020_p2 }
  0x8c   : > { %475 = vmatprep.subr.bf16.mxu0 %v917_v21  ;;  %798 = vmatprep.subr.bf16.mxu1 %v917_v21  ;;  %v927_v28 = vpop.eup %926 }
  0x8d   : > { %v929_v30 = vpop.eup %928  ;;  %v337_v31 = vadd.f32 1.0, %v927_v28  ;;  %v340_v35 = vmul.f32 -0.5, %v927_v28  ;;  %v343_v39 = vand.u32 2147483647, %v927_v28 }
  0x8e   : > { %v931_v32 = vpop.eup %930  ;;  %v346_v33 = vadd.f32 1.0, %v929_v30  ;;  %v349_v36 = vmul.f32 -0.5, %v929_v30  ;;  %v352_v41 = vand.u32 2147483647, %v929_v30 }
  0x8f   : > { %476 = vmatpush1.bf16.msra.mxu0 %v919_v24  ;;  %806 = vmatpush1.bf16.msra.mxu1 %v919_v24  ;;  %932 = vlog2.f32 %v337_v31  ;;  %v355_v34 = vadd.f32 1.0, %v931_v32  ;;  %v358_v37 = vmul.f32 -0.5, %v931_v32  ;;  %v341_v38 = vadd.f32 1.0, %v340_v35 }
  0x90   : > { %477 = vmatprep.subr.bf16.mxu0 %v920_v25  ;;  %799 = vmatprep.subr.bf16.mxu1 %v920_v25  ;;  %934 = vlog2.f32 %v346_v33  ;;  %v350_v40 = vadd.f32 1.0, %v349_v36  ;;  %v361_v43 = vand.u32 2147483647, %v931_v32  ;;  %vm1407_vm0 = vcmp.lt.f32.partialorder %v343_v39, 0.0004427343 }
  0x91   : > { %936 = vlog2.f32 %v355_v34  ;;  %v359_v42 = vadd.f32 1.0, %v358_v37  ;;  %v342_v44 = vmul.f32 %v927_v28, %v341_v38  ;;  %vm353_vm2 = vcmp.lt.f32.partialorder %v352_v41, 0.0004427343 }
  0x92   : > { %v351_v47 = vmul.f32 %v929_v30, %v350_v40  ;;  %vm362_vm4 = vcmp.lt.f32.partialorder %v361_v43, 0.0004427343 }
  0x93   : > { %478 = vmatpush1.bf16.msra.mxu0 %v922_v26  ;;  %807 = vmatpush1.bf16.msra.mxu1 %v922_v26  ;;  %v360_v50 = vmul.f32 %v931_v32, %v359_v42 }
  0x94   : > { %479 = vmatprep.subr.bf16.mxu0 %v923_v27  ;;  %800 = vmatprep.subr.bf16.mxu1 %v923_v27 }
  0x97   : > { %480 = vmatpush1.bf16.msra.mxu0 %v925_v29  ;;  %808 = vmatpush1.bf16.msra.mxu1 %v925_v29 }
  0x99   : > { %v933_v45 = vpop.eup %932 }
  0x9a   : > { %v935_v48 = vpop.eup %934  ;;  %v339_v49 = vmul.f32 0.6931472, %v933_v45 }
  0x9b   : > { %v937_v51 = vpop.eup %936  ;;  %v348_v52 = vmul.f32 0.6931472, %v935_v48 }
  0x9c   : > { %v345_v53 = vsel %vm1407_vm0, %v342_v44, %v339_v49  ;;  %v357_v54 = vmul.f32 0.6931472, %v937_v51 }
  0x9d   : > { %v354_v55 = vsel %vm353_vm2, %v351_v47, %v348_v52  ;;  %v364_v56 = vsel %vm325_vm1, %v1389_v11, %v345_v53 }
  0x9e   : > { %v365_v57 = vsel %vm326_vm3, %v1393_v14, %v354_v55  ;;  %v363_v58 = vsel %vm362_vm4, %v360_v50, %v357_v54 }
  0x9f   : > { %v367_v59 = vpack.c.bf16 %v365_v57, %v364_v56  ;;  %v366_v60 = vsel %vm327_vm5, %v1395_v15, %v363_v58 }
  0xa0   : > { %v368_v61 = vpack.c.bf16 %v366_v60, %v366_v60 }
  0xa1   : > { %498 = vmatmul.mubr.bf16.vlgmr.msra.gmra.mrb[0].mxu0 %v367_v59 }
  0xa2   : > { %508 = vmatmul.mubr.bf16.vlgmr.msra.gmra.mrb[0].mxu1 %v368_v61 }
 0x174   : > { %v499_v63 = vpop.f32.mrb[0].mxu0 }
 0x175   : > { %v517_v0 = vadd.f32 %v516_v62, %v499_v63  ;;  %v509_v1 = vpop.f32.mrb[0].mxu1  ;;  %v501_v2 = vpop.f32.mrb[1].mxu0 }
 0x176   : > { %v519_v3 = vadd.f32 %v516_v62, %v509_v1  ;;  %v511_v4 = vpop.f32.mrb[1].mxu1  ;;  %v503_v5 = vpop.f32.mrb[2].mxu0 }
 0x177   : > { %v520_v6 = vadd.f32 %v517_v0, %v501_v2  ;;  %v518_v7 = vadd.f32 %v516_v62, %v503_v5  ;;  %v513_v8 = vpop.f32.mrb[2].mxu1  ;;  %v505_v9 = vpop.f32.mrb[3].mxu0 }
 0x178   : > { %v522_v10 = vadd.f32 %v519_v3, %v511_v4  ;;  %v514_v11 = vpop.f32.mrb[3].mxu1 }
 0x179   : > { %938 = vrcp.f32 %v520_v6  ;;  %546 = vst [vmem:[%s306_s8] sm:$0xff] %v520_v6  ;;  %v521_v12 = vadd.f32 %v518_v7, %v505_v9 }
 0x17a   : > { %940 = vrcp.f32 %v522_v10  ;;  %548 = vst [vmem:[%s306_s8 + $0x10] sm:$0xff] %v522_v10 }
 0x17b   : > { %942 = vrcp.f32 %v521_v12  ;;  %547 = vst [vmem:[%s306_s8 + $0x8] sm:$0xff] %v521_v12 }
 0x17c   : > { %1030 = shalt.err (!%p1027_p3)
}
 0x17d   : > { %s1031_s7 = scalar_lea.hbm %s1432_s21, 384  ;;  %s1035_s24 = scalar_lea.hbm %s1525_s3, 768 }
 0x17e   : > { %p1032_p7 = scmp.ne.s32.totalorder %s1432_s21, %s1031_s7  ;;  %p1036_p9 = scmp.lt.u32.totalorder %s1432_s21, %s1525_s3 }
 0x17f   : > { %p1037_p0 = scmp.lt.u32.totalorder %s1035_s24, %s1031_s7  ;;  %p1039_p13 = scmp.lt.u32.totalorder %s1031_s7, %s1432_s21 }
 0x180   : > { %p1033_p6 = pnand %p1032_p7, %p1548_p8 }
 0x181   : > { %p1038_p4 = por %p1037_p0, %p1036_p9 }
 0x182   : > { %p1034_p1 = pneg %p1033_p6 }
 0x183   : > { %p1040_p12 = por %p1039_p13, %p1038_p4 }
 0x185   : > { %p1041_p2 = pnand %p1040_p12, %p1034_p1 }
 0x187   : > { %1044 = shalt.err (!%p1041_p2)
}
 0x188   : > { %s1149_s8 = smov 128   ;;  %s1150_s11 = smov 8   ;;  %v939_v13 = vpop.eup %938  ;;  %v536_v16 = vmul.f32 -85.0, %v501_v2  ;;  %v538_v20 = vmul.f32 -85.0, %v511_v4  ;;  %v537_v23 = vmul.f32 -85.0, %v505_v9 }
 0x189   : > { %821 = dma.vmem_to_hbm [thread:$0]  (%p1548_p8), %s1425_s6, 384, %s1432_s21, %s553_s22, %s1149_s8, %s1149_s8, %s1150_s11   ;;  %v941_v14 = vpop.eup %940  ;;  %v526_v15 = vmul.f32 %v939_v13, %v520_v6 }
 0x18a   : > { %s535_s13 = smul.f32 -70.0, %s1420_s25  ;;  %v943_v17 = vpop.eup %942  ;;  %v528_v19 = vmul.f32 %v941_v14, %v522_v10  ;;  %s313_s25 = scalar_lea.vmem [#allocation10], %s1361_s14 }
 0x18b   : > { %v529_v21 = vsub.f32 2.0, %v526_v15  ;;  %v527_v22 = vmul.f32 %v943_v17, %v521_v12  ;;  %s593_s6 = sshll.u32 %s313_s25, 4  ;;  %s1468_s23 = scalar_lea.hbm %s1526_s4, %s811_s9  ;;  %s1470_s6 = int_to_ptr.vmem [resolvable:$true] %s593_s6 }
 0x18c   : > { %v539_v18 = vstv %s535_s13  ;;  %v531_v24 = vsub.f32 2.0, %v528_v19  ;;  %s558_s14 = scalar_lea.sflag [#allocation11], %s1358_s30  ;;  %s1045_s0 = scalar_lea.vmem %s1470_s6, 384 }
 0x18d   : > { %v532_v25 = vmul.f32 %v939_v13, %v529_v21  ;;  %v540_v26 = vadd.f32 %v539_v18, %v536_v16  ;;  %v530_v27 = vsub.f32 2.0, %v527_v22  ;;  %v542_v29 = vadd.f32 %v539_v18, %v538_v20  ;;  %p1046_p10 = scmp.ne.s32.totalorder %s1470_s6, %s1045_s0  ;;  %s1151_s10 = smov [#allocation10]  }
 0x18e   : > { %v534_v28 = vmul.f32 %v941_v14, %v531_v24  ;;  %v541_v32 = vadd.f32 %v539_v18, %v537_v23  ;;  %s1049_s18 = sshll.u32 %s1151_s10, 4  ;;  %s1050_s18 = int_to_ptr.vmem [resolvable:$false] %s1049_s18 }
 0x18f   : > { %v543_v30 = vmul.f32 %v540_v26, %v532_v25  ;;  %v533_v31 = vmul.f32 %v943_v17, %v530_v27  ;;  %p1047_p11 = pnand %p1046_p10, %p1548_p8  ;;  %s1051_s12 = scalar_lea.vmem %s1050_s18, 768 }
 0x190   : > { %v545_v33 = vmul.f32 %v542_v29, %v534_v28  ;;  %p1052_p3 = scmp.lt.s32.totalorder %s1470_s6, %s1050_s18  ;;  %p1053_p7 = scmp.lt.s32.totalorder %s1051_s12, %s1045_s0 }
 0x191   : > { %549 = vst [vmem:[%s313_s25] sm:$0xff] %v543_v30  ;;  %v544_v34 = vmul.f32 %v541_v32, %v533_v31  ;;  %p1048_p5 = pneg %p1047_p11 }
 0x192   : > { %551 = vst [vmem:[%s313_s25 + $0x10] sm:$0xff] %v545_v33  ;;  %p1054_p6 = por %p1053_p7, %p1052_p3 }
 0x193   : > { %550 = vst [vmem:[%s313_s25 + $0x8] sm:$0xff] %v544_v34 }
 0x194   : > { %p1055_p1 = pnand %p1054_p6, %p1048_p5 }
 0x196   : > { %1058 = shalt.err (!%p1055_p1)
}
 0x197   : > { %s1059_s9 = scalar_lea.hbm %s1468_s23, 384  ;;  %s1063_s1 = scalar_lea.hbm %s1526_s4, 768 }
 0x198   : > { %p1060_p9 = scmp.ne.s32.totalorder %s1468_s23, %s1059_s9  ;;  %p1064_p13 = scmp.lt.u32.totalorder %s1468_s23, %s1526_s4 }
 0x199   : > { %p1065_p12 = scmp.lt.u32.totalorder %s1063_s1, %s1059_s9  ;;  %p1067_p10 = scmp.lt.u32.totalorder %s1059_s9, %s1468_s23 }
 0x19a   : > { %p1061_p0 = pnand %p1060_p9, %p1548_p8 }
 0x19b   : > { %p1066_p2 = por %p1065_p12, %p1064_p13 }
 0x19c   : > { %p1062_p4 = pneg %p1061_p0 }
 0x19d   : > { %p1068_p11 = por %p1067_p10, %p1066_p2 }
 0x19f   : > { %p1069_p5 = pnand %p1068_p11, %p1062_p4 }
 0x1a1   : > { %1072 = shalt.err (!%p1069_p5)
}
 0x1a2   : > { %822 = dma.vmem_to_hbm [thread:$0]  (%p1548_p8), %s1470_s6, 384, %s1468_s23, %s558_s14, %s1149_s8, %s1149_s8, %s1150_s11  }
 0x1a3 PF: > { %s608_s5 = sand.u32 1, %s1119_s15   ;;  %p1549_p3 = scmp.ne.s32.totalorder %s1537_s27, 0 }
 0x1a4   : > { %p1550_p7 = scmp.ge.s32.totalorder %s1139_s20, 2  ;;  %s609_s13 = scalar_lea.sflag [#allocation4], %s608_s5 }
 0x1a6   : > { %p837_p6 = pnand %p1550_p7, %p1549_p3 }
 0x1a8   : > { %1110 = dma.done.wait (!%p837_p6), %s609_s13, 384  }
 0x1a9   : > { %1112 = vsyncadd (!%p837_p6), %s609_s13, 4294966912  ;;  %s618_s26 = scalar_lea.sflag [#allocation11], %s608_s5 }
 0x1aa   : > { %1114 = dma.done.wait (!%p837_p6), %s618_s26, 384  }
 0x1ab   : > { %1116 = vsyncadd (!%p837_p6), %s618_s26, 4294966912  ;;  %s28_s20 = sadd.s32 1, %s1139_s20   ;;  %s1551_s30 = sld [smem:[#allocation18_spill]] }
 0x1ac   : > { %p25_p1 = scmp.ge.s32.totalorder %s28_s20, 4   ;;  %s1552_s8 = sld [smem:[#allocation17_spill]] }
 0x1ad   : > { %s1553_s15 = smov %s1123_s16  ;;  %s1554_s16 = smov %s1127_s17 }
 0x1ae   : > { %s1556_s18 = smov %s1135_s19  ;;  %27 = sbr.rel (!%p25_p1) target bundleno = 14 (0xe), region = 112 }
 0x1b1   : > { %s1555_s17 = smov %s1551_s30 }
 0x1b2   : > { %s1557_s19 = smov %s1552_s8 }
 0x1b5   :  { %623 = vsyncpa [#allocation3], 1 }
 0x1b6   :  { %625 = vsyncpa [#allocation3 + $0x1], 1 }
 0x1b7   :  { %626 = vsyncpa [#allocation8], 1 }
 0x1b8   :  { %628 = vsyncpa [#allocation8 + $0x1], 1 }
 0x1b9   :  { %629 = vsyncpa [#allocation4], 1 }
 0x1ba   :  { %631 = vsyncpa [#allocation4 + $0x1], 1 }
 0x1bb   :  { %632 = vsyncpa [#allocation11], 1 }
 0x1bc   :  { %634 = vsyncpa [#allocation11 + $0x1], 1 }
 0x1bd   :  { %635 = vsyncpa [#allocation5], 1 }
 0x1be   :  { %637 = vsyncpa [#allocation5 + $0x1], 1 }

</bundles_post_ra>
